<compile_context>
chip_gen: v6e
topology: v6e:2x2x1
jax: 0.10.0
libtpu: 0.0.40
codegen_flags: <defaults>
</compile_context>

<pallas_src>
import functools

import jax
import jax.numpy as jnp
from jax.experimental import pallas as pl
from jax.experimental.pallas import tpu as pltpu

LANE = 128   # TPU lane width: weight output dims padded to this
ALIGN = 16   # batch-tile alignment (bf16 sublane packing) for multi-tile grids


def _round_up(n, m):
    return ((n + m - 1) // m) * m


def _cdiv(a, b):
    return -(-a // b)


def mlp_kernel(x_ref, w1_ref, b1_ref, w2_ref, b2_ref, w3_ref, b3_ref, o_ref):
    # x arrives fp32 at native width; cast to bf16 in-kernel (MXU-native).
    # Every dot accumulates in fp32 on the MXU; bias add + tanh in fp32;
    # intermediates narrowed to bf16 immediately after tanh.
    x = x_ref[...].astype(jnp.bfloat16)
    h1 = jnp.tanh(
        jnp.dot(x, w1_ref[...], preferred_element_type=jnp.float32) + b1_ref[...]
    ).astype(jnp.bfloat16)
    h2 = jnp.tanh(
        jnp.dot(h1, w2_ref[...], preferred_element_type=jnp.float32) + b2_ref[...]
    ).astype(jnp.bfloat16)
    o_ref[...] = (
        jnp.dot(h2, w3_ref[...], preferred_element_type=jnp.float32) + b3_ref[...]
    ).astype(o_ref.dtype)


def prepare_params(params):
    """One-time weight/bias padding + bf16 cast (hoisted out of the call path).

    Weights are stored pre-transposed (in, out). Only output dims are padded to
    the 128-lane width; w1's contraction dim stays at its native width (the MXU
    pads K internally at no HBM cost). Padded lanes are exact zeros, so they
    propagate zeros through tanh and are sliced off at the end.
    """
    w1t, b1 = params["w1t"], params["b1"]
    w2t, b2 = params["w2t"], params["b2"]
    w3t, b3 = params["w3t"], params["b3"]
    n_inputs, n_hidden = w1t.shape
    n_actions = w3t.shape[1]
    f_hid = _round_up(n_hidden, LANE)
    f_out = _round_up(n_actions, LANE)

    def pad2(a, rows, cols, dtype):
        return jnp.pad(
            a, ((0, rows - a.shape[0]), (0, cols - a.shape[1]))
        ).astype(dtype)

    return {
        "w1": pad2(w1t, n_inputs, f_hid, jnp.bfloat16),
        "b1": pad2(b1, 1, f_hid, jnp.float32),
        "w2": pad2(w2t, f_hid, f_hid, jnp.bfloat16),
        "b2": pad2(b2, 1, f_hid, jnp.float32),
        "w3": pad2(w3t, f_hid, f_out, jnp.bfloat16),
        "b3": pad2(b3, 1, f_out, jnp.float32),
    }


@functools.partial(
    jax.jit,
    static_argnames=("n_actions", "max_block_batch", "num_tiles", "out_dtype"),
)
def pytorch_mlp_forward(x, prepared, *, n_actions, max_block_batch=4096,
                        num_tiles=None, out_dtype=jnp.float32):
    """x: (batch, n_inputs) float32. prepared: output of prepare_params().

    Returns (batch, n_actions) in out_dtype (fp32 by default, like PyTorch).
    num_tiles: optional override of the grid length (e.g. 2 on v7x so the
    'parallel' grid splits evenly across its two TensorCores).
    """
    w1, b1 = prepared["w1"], prepared["b1"]
    w2, b2 = prepared["w2"], prepared["b2"]
    w3, b3 = prepared["w3"], prepared["b3"]

    batch, n_inputs = x.shape
    assert n_inputs == w1.shape[0], "x feature dim must match fc1 fan-in"
    f_hid = w1.shape[1]
    f_out = w3.shape[1]

    # Tile selection: fewest, biggest tiles (kernel is overhead/HBM-bound).
    k = num_tiles if num_tiles is not None else max(1, _cdiv(batch, max_block_batch))
    if k == 1:
        tb = batch                 # full-array block: no (8,128) constraint, no padding
    else:
        tb = _round_up(_cdiv(batch, k), ALIGN)   # track batch -> minimal dead rows
    b_pad = k * tb

    xp = x if b_pad == batch else jnp.pad(x, ((0, b_pad - batch), (0, 0)))

    # x / out tiled along the batch grid axis; weights/biases get constant
    # index_maps so they stay VMEM-resident for all grid steps.
    x_spec = pl.BlockSpec((tb, n_inputs), lambda i: (i, 0))
    o_spec = pl.BlockSpec((tb, f_out), lambda i: (i, 0))

    def resident(shape):
        return pl.BlockSpec(shape, lambda i: (0, 0))

    out_bytes = jnp.dtype(out_dtype).itemsize
    cost = pl.CostEstimate(                       # advisory (padded dims)
        flops=2 * batch * (n_inputs * f_hid + f_hid * f_hid + f_hid * f_out),
        transcendentals=2 * batch * f_hid,
        bytes_accessed=(b_pad * n_inputs * 4 + b_pad * f_out * out_bytes
                        + 2 * (n_inputs * f_hid + f_hid * f_hid + f_hid * f_out)
                        + 4 * (2 * f_hid + f_out)),
    )

    out_padded = pl.pallas_call(
        mlp_kernel,
        out_shape=jax.ShapeDtypeStruct((b_pad, f_out), out_dtype),
        grid=(k,),
        in_specs=[
            x_spec,
            resident((n_inputs, f_hid)), resident((1, f_hid)),
            resident((f_hid, f_hid)), resident((1, f_hid)),
            resident((f_hid, f_out)), resident((1, f_out)),
        ],
        out_specs=o_spec,
        compiler_params=pltpu.CompilerParams(
            dimension_semantics=("parallel",),
            vmem_limit_bytes=32 * 1024 * 1024,    # headroom over v5e's 16 MiB default
        ),
        cost_estimate=cost,
    )(xp, w1, b1, w2, b2, w3, b3)

    return out_padded[:batch, :n_actions]


def init_params(key, n_inputs=30, n_hidden=24, n_actions=18):
    """Deterministic init mimicking PyTorch nn.Linear default (U[-1/sqrt(fan_in), +])."""
    ks = jax.random.split(key, 6)

    def lin(kw, kb, fan_in, fan_out):
        bound = 1.0 / jnp.sqrt(fan_in)
        # weights stored pre-transposed: (in, out), so y = x @ W_t + b == nn.Linear
        w_t = jax.random.uniform(kw, (fan_in, fan_out), jnp.float32, -bound, bound)
        b = jax.random.uniform(kb, (1, fan_out), jnp.float32, -bound, bound)
        return w_t, b

    w1t, b1 = lin(ks[0], ks[1], n_inputs, n_hidden)
    w2t, b2 = lin(ks[2], ks[3], n_hidden, n_hidden)
    w3t, b3 = lin(ks[4], ks[5], n_hidden, n_actions)
    return {"w1t": w1t, "b1": b1, "w2t": w2t, "b2": b2, "w3t": w3t, "b3": b3}


def reference_forward_f32(x, p):
    h1 = jnp.tanh(x @ p["w1t"] + p["b1"])
    h2 = jnp.tanh(h1 @ p["w2t"] + p["b2"])
    return h2 @ p["w3t"] + p["b3"]


def reference_forward_bf16(x, p):
    # Mirrors the kernel's precision chain: bf16 matmul inputs, fp32 MXU
    # accumulation, bias add + tanh in fp32, bf16 narrowing before next dot.
    def dot(a, w):
        return jnp.dot(a.astype(jnp.bfloat16), w.astype(jnp.bfloat16),
                       preferred_element_type=jnp.float32)

    h1 = jnp.tanh(dot(x, p["w1t"]) + p["b1"])
    h2 = jnp.tanh(dot(h1, p["w2t"]) + p["b2"])
    return dot(h2, p["w3t"]) + p["b3"]


if __name__ == "__main__":
    key = jax.random.PRNGKey(0)
    k_x, k_x2, k_x3, k_p = jax.random.split(key, 4)

    n_inputs, n_hidden, n_actions = 30, 24, 18
    params = init_params(k_p, n_inputs, n_hidden, n_actions)
    prepared = prepare_params(params)   # one-time padding/cast, reused by every call

    # Case 1: tiny batch (matches the module's toy usage) — single full-array tile.
    batch = 8
    x = jax.random.normal(k_x, (batch, n_inputs), jnp.float32)
    out = jax.block_until_ready(pytorch_mlp_forward(x, prepared, n_actions=n_actions))
    assert out.shape == (batch, n_actions)
    assert jnp.allclose(out, reference_forward_bf16(x, params), atol=5e-4, rtol=5e-4)
    assert jnp.allclose(out, reference_forward_f32(x, params), atol=5e-2, rtol=0.0)

    # Case 2: ragged moderate batch — still grid=1, no row padding, no wrapper pad.
    batch2 = 600
    x2 = jax.random.normal(k_x2, (batch2, n_inputs), jnp.float32)
    out2 = jax.block_until_ready(pytorch_mlp_forward(x2, prepared, n_actions=n_actions))
    assert out2.shape == (batch2, n_actions)
    assert jnp.allclose(out2, reference_forward_bf16(x2, params), atol=5e-4, rtol=5e-4)
    assert jnp.allclose(out2, reference_forward_f32(x2, params), atol=5e-2, rtol=0.0)

    # Case 3: multi-tile pipelined path (small max_block_batch forces grid=3,
    # tile size tracks the batch so dead-row padding stays minimal).
    batch3 = 1000
    x3 = jax.random.normal(k_x3, (batch3, n_inputs), jnp.float32)
    out3 = jax.block_until_ready(
        pytorch_mlp_forward(x3, prepared, n_actions=n_actions, max_block_batch=384))
    assert out3.shape == (batch3, n_actions)
    assert jnp.allclose(out3, reference_forward_bf16(x3, params), atol=5e-4, rtol=5e-4)

    # Case 4: explicit even 2-way grid (v7x dual-TensorCore style split).
    out4 = jax.block_until_ready(
        pytorch_mlp_forward(x2, prepared, n_actions=n_actions, num_tiles=2))
    assert out4.shape == (batch2, n_actions)
    assert jnp.allclose(out4, reference_forward_bf16(x2, params), atol=5e-4, rtol=5e-4)

    print("KERNEL_OK")
</pallas_src>

<mosaic_0001>
module attributes {stable_mosaic.version = 11 : i64} {
  func.func @mlp_kernel(%arg0: i32, %arg1: memref<8x30xf32, #tpu.memory_space<vmem>>, %arg2: memref<30x128xbf16, #tpu.memory_space<vmem>>, %arg3: memref<1x128xf32, #tpu.memory_space<vmem>>, %arg4: memref<128x128xbf16, #tpu.memory_space<vmem>>, %arg5: memref<1x128xf32, #tpu.memory_space<vmem>>, %arg6: memref<128x128xbf16, #tpu.memory_space<vmem>>, %arg7: memref<1x128xf32, #tpu.memory_space<vmem>>, %arg8: memref<8x128xf32, #tpu.memory_space<vmem>>) attributes {dimension_semantics = [#tpu.dimension_semantics<parallel>], iteration_bounds = array<i64: 1>, scalar_prefetch = 0 : i64, scratch_operands = 0 : i64, tpu.core_type = #tpu.core_type<tc>, window_params = [{transform_indices = @transform_0, window_bounds = array<i64: 8, 30>}, {pipeline_mode = #tpu.pipeline_mode<synchronous>, transform_indices = @transform_1, window_bounds = array<i64: 30, 128>}, {pipeline_mode = #tpu.pipeline_mode<synchronous>, transform_indices = @transform_2, window_bounds = array<i64: 1, 128>}, {pipeline_mode = #tpu.pipeline_mode<synchronous>, transform_indices = @transform_3, window_bounds = array<i64: 128, 128>}, {pipeline_mode = #tpu.pipeline_mode<synchronous>, transform_indices = @transform_4, window_bounds = array<i64: 1, 128>}, {pipeline_mode = #tpu.pipeline_mode<synchronous>, transform_indices = @transform_5, window_bounds = array<i64: 128, 128>}, {pipeline_mode = #tpu.pipeline_mode<synchronous>, transform_indices = @transform_6, window_bounds = array<i64: 1, 128>}, {transform_indices = @transform_7, window_bounds = array<i64: 8, 128>}]} {
    %c0 = arith.constant 0 : index
    %c0_0 = arith.constant 0 : index
    %0 = vector.load %arg1[%c0, %c0_0] : memref<8x30xf32, #tpu.memory_space<vmem>>, vector<8x30xf32>
    %1 = arith.truncf %0 : vector<8x30xf32> to vector<8x30xbf16>
    %c0_1 = arith.constant 0 : index
    %c0_2 = arith.constant 0 : index
    %2 = vector.load %arg2[%c0_1, %c0_2] : memref<30x128xbf16, #tpu.memory_space<vmem>>, vector<30x128xbf16>
    %cst = arith.constant dense<0.000000e+00> : vector<8x128xf32>
    %3 = tpu.matmul %1, %2, %cst {dimension_numbers = #tpu.dot_dimension_numbers<[1], [0], [0], [1], [0, 0, 1, 1], [], []>} : vector<8x30xbf16>, vector<30x128xbf16>, vector<8x128xf32> -> vector<8x128xf32>
    %c0_3 = arith.constant 0 : index
    %c0_4 = arith.constant 0 : index
    %4 = vector.load %arg3[%c0_3, %c0_4] : memref<1x128xf32, #tpu.memory_space<vmem>>, vector<1x128xf32>
    %5 = vector.broadcast %4 : vector<1x128xf32> to vector<8x128xf32>
    %6 = arith.addf %3, %5 : vector<8x128xf32>
    %7 = math.tanh %6 : vector<8x128xf32>
    %8 = arith.truncf %7 : vector<8x128xf32> to vector<8x128xbf16>
    %c0_5 = arith.constant 0 : index
    %c0_6 = arith.constant 0 : index
    %9 = vector.load %arg4[%c0_5, %c0_6] : memref<128x128xbf16, #tpu.memory_space<vmem>>, vector<128x128xbf16>
    %cst_7 = arith.constant dense<0.000000e+00> : vector<8x128xf32>
    %10 = tpu.matmul %8, %9, %cst_7 {dimension_numbers = #tpu.dot_dimension_numbers<[1], [0], [0], [1], [0, 0, 1, 1], [], []>} : vector<8x128xbf16>, vector<128x128xbf16>, vector<8x128xf32> -> vector<8x128xf32>
    %c0_8 = arith.constant 0 : index
    %c0_9 = arith.constant 0 : index
    %11 = vector.load %arg5[%c0_8, %c0_9] : memref<1x128xf32, #tpu.memory_space<vmem>>, vector<1x128xf32>
    %12 = vector.broadcast %11 : vector<1x128xf32> to vector<8x128xf32>
    %13 = arith.addf %10, %12 : vector<8x128xf32>
    %14 = math.tanh %13 : vector<8x128xf32>
    %15 = arith.truncf %14 : vector<8x128xf32> to vector<8x128xbf16>
    %c0_10 = arith.constant 0 : index
    %c0_11 = arith.constant 0 : index
    %16 = vector.load %arg6[%c0_10, %c0_11] : memref<128x128xbf16, #tpu.memory_space<vmem>>, vector<128x128xbf16>
    %cst_12 = arith.constant dense<0.000000e+00> : vector<8x128xf32>
    %17 = tpu.matmul %15, %16, %cst_12 {dimension_numbers = #tpu.dot_dimension_numbers<[1], [0], [0], [1], [0, 0, 1, 1], [], []>} : vector<8x128xbf16>, vector<128x128xbf16>, vector<8x128xf32> -> vector<8x128xf32>
    %c0_13 = arith.constant 0 : index
    %c0_14 = arith.constant 0 : index
    %18 = vector.load %arg7[%c0_13, %c0_14] : memref<1x128xf32, #tpu.memory_space<vmem>>, vector<1x128xf32>
    %19 = vector.broadcast %18 : vector<1x128xf32> to vector<8x128xf32>
    %20 = arith.addf %17, %19 : vector<8x128xf32>
    %c0_15 = arith.constant 0 : index
    %c0_16 = arith.constant 0 : index
    %21 = vector.load %arg8[%c0_15, %c0_16] : memref<8x128xf32, #tpu.memory_space<vmem>>, vector<8x128xf32>
    tpu.vector_store %arg8[%c0_15, %c0_16], %20 {strides = array<i32>} : memref<8x128xf32, #tpu.memory_space<vmem>>, vector<8x128xf32>,
    return
  }
  func.func @transform_0(%arg0: i32) -> (i32, i32) {
    %c0_i32 = arith.constant 0 : i32
    %c0_i32_0 = arith.constant 0 : i32
    return %arg0, %c0_i32 : i32, i32
  }
  func.func @transform_1(%arg0: i32) -> (i32, i32) {
    %c0_i32 = arith.constant 0 : i32
    %c0_i32_0 = arith.constant 0 : i32
    %c0_i32_1 = arith.constant 0 : i32
    return %c0_i32, %c0_i32_0 : i32, i32
  }
  func.func @transform_2(%arg0: i32) -> (i32, i32) {
    %c0_i32 = arith.constant 0 : i32
    %c0_i32_0 = arith.constant 0 : i32
    %c0_i32_1 = arith.constant 0 : i32
    return %c0_i32, %c0_i32_0 : i32, i32
  }
  func.func @transform_3(%arg0: i32) -> (i32, i32) {
    %c0_i32 = arith.constant 0 : i32
    %c0_i32_0 = arith.constant 0 : i32
    %c0_i32_1 = arith.constant 0 : i32
    return %c0_i32, %c0_i32_0 : i32, i32
  }
  func.func @transform_4(%arg0: i32) -> (i32, i32) {
    %c0_i32 = arith.constant 0 : i32
    %c0_i32_0 = arith.constant 0 : i32
    %c0_i32_1 = arith.constant 0 : i32
    return %c0_i32, %c0_i32_0 : i32, i32
  }
  func.func @transform_5(%arg0: i32) -> (i32, i32) {
    %c0_i32 = arith.constant 0 : i32
    %c0_i32_0 = arith.constant 0 : i32
    %c0_i32_1 = arith.constant 0 : i32
    return %c0_i32, %c0_i32_0 : i32, i32
  }
  func.func @transform_6(%arg0: i32) -> (i32, i32) {
    %c0_i32 = arith.constant 0 : i32
    %c0_i32_0 = arith.constant 0 : i32
    %c0_i32_1 = arith.constant 0 : i32
    return %c0_i32, %c0_i32_0 : i32, i32
  }
  func.func @transform_7(%arg0: i32) -> (i32, i32) {
    %c0_i32 = arith.constant 0 : i32
    %c0_i32_0 = arith.constant 0 : i32
    return %arg0, %c0_i32 : i32, i32
  }
}

</mosaic_0001>

<bundles_post_ra>
// kernel: pytorch_mlp_forward.1
= control target key start
LH: loop header
LB: loop body
LE: loop exit
PB: predicated region body
PF: predicated region fallthrough
CT: control target
= control target key end

     0   :  { %12 = vsyncpa [#allocation3], 0  ;;  %s733_s0 = inlined_call_operand.hbm [shape: f32[8,30], index: 0, kind: input, shape index: {}]   ;;  %s734_s1 = inlined_call_operand.hbm [shape: bf16[30,128], index: 1, kind: input, shape index: {}]   ;;  %s735_s2 = inlined_call_operand.vmem [shape: f32[1,128], index: 2, kind: input, shape index: {}]   ;;  %s736_s3 = inlined_call_operand.hbm [shape: bf16[128,128], index: 3, kind: input, shape index: {}]   ;;  %s737_s4 = inlined_call_operand.vmem [shape: f32[1,128], index: 4, kind: input, shape index: {}]   ;;  %s738_s5 = inlined_call_operand.hbm [shape: bf16[128,128], index: 5, kind: input, shape index: {}]   ;;  %s739_s6 = inlined_call_operand.vmem [shape: f32[1,128], index: 6, kind: input, shape index: {}]   ;;  %s740_s7 = inlined_call_operand.hbm [shape: f32[8,128], index: 7, kind: output, shape index: {}]  }
   0x1   :  { %13 = vsyncpa [#allocation6], 0 }
   0x2   :  { %14 = vsyncpa [#allocation9], 0 }
   0x3   :  { %15 = vsyncpa [#allocation4], 0  ;;  %s627_s24 = smov [#allocation5]  }
   0x4   :  { %s31_s25 = sshll.u32 %s627_s24, 4  ;;  %s32_s25 = int_to_ptr.vmem [resolvable:$true] %s31_s25 }
   0x5   :  { %s527_s26 = scalar_lea.vmem %s32_s25, 256  ;;  %p532_p1 = scmp.lt.s32.totalorder %s32_s25, %s32_s25 }
   0x6   :  { %p528_p0 = scmp.ne.s32.totalorder %s32_s25, %s527_s26  ;;  %p533_p2 = scmp.lt.s32.totalorder %s527_s26, %s527_s26 }
   0x8   :  { %p534_p3 = por %p533_p2, %p532_p1 }
   0xa   :  { %p535_p4 = pnand %p534_p3, %p528_p0 }
   0xc   :  { %538 = shalt.err (!%p535_p4)
}
   0xd   :  { %s628_s27 = smov 64   ;;  %s629_s28 = smov 4  }
   0xe   :  { %37 = dma.hbm_to_vmem [thread:$0]  %s734_s1, 256, %s32_s25, [#allocation6], %s628_s27, %s628_s27, %s629_s28  }
   0xf   :  { %s630_s8 = smov [#allocation2]   ;;  %s631_s10 = smov [#allocation7]  }
  0x10   :  { %s22_s9 = sshll.u32 %s630_s8, 4  ;;  %s45_s11 = sshll.u32 %s631_s10, 4  ;;  %s23_s9 = int_to_ptr.vmem [resolvable:$true] %s22_s9  ;;  %s46_s11 = int_to_ptr.vmem [resolvable:$true] %s45_s11 }
  0x11   :  { %s547_s12 = scalar_lea.vmem %s23_s9, 128  ;;  %p552_p6 = scmp.lt.s32.totalorder %s23_s9, %s23_s9 }
  0x12   :  { %p548_p5 = scmp.ne.s32.totalorder %s23_s9, %s547_s12  ;;  %p553_p7 = scmp.lt.s32.totalorder %s547_s12, %s547_s12 }
  0x14   :  { %p554_p8 = por %p553_p7, %p552_p6 }
  0x16   :  { %p555_p9 = pnand %p554_p8, %p548_p5 }
  0x18   :  { %558 = shalt.err (!%p555_p9)
}
  0x19   :  { %25 = dma.hbm_to_vmem [thread:$0]  %s733_s0, 128, %s23_s9, [#allocation3]  }
  0x1a   :  { %s567_s15 = scalar_lea.vmem %s46_s11, 1024  ;;  %p572_p11 = scmp.lt.s32.totalorder %s46_s11, %s46_s11 }
  0x1b   :  { %p568_p10 = scmp.ne.s32.totalorder %s46_s11, %s567_s15  ;;  %p573_p12 = scmp.lt.s32.totalorder %s567_s15, %s567_s15 }
  0x1d   :  { %p574_p13 = por %p573_p12, %p572_p11 }
  0x1f   :  { %p575_p0 = pnand %p574_p13, %p568_p10 }
  0x21   :  { %578 = shalt.err (!%p575_p0)
}
  0x22   :  { %51 = dma.hbm_to_vmem [thread:$0]  %s736_s3, 1024, %s46_s11, [#allocation6], %s628_s27, %s628_s27, %s629_s28  }
  0x23   :  { %s632_s17 = smov [#allocation8]  }
  0x24   :  { %s59_s18 = sshll.u32 %s632_s17, 4  ;;  %s60_s18 = int_to_ptr.vmem [resolvable:$true] %s59_s18 }
  0x25   :  { %s587_s19 = scalar_lea.vmem %s60_s18, 1024  ;;  %p592_p2 = scmp.lt.s32.totalorder %s60_s18, %s60_s18 }
  0x26   :  { %p588_p1 = scmp.ne.s32.totalorder %s60_s18, %s587_s19  ;;  %p593_p3 = scmp.lt.s32.totalorder %s587_s19, %s587_s19 }
  0x28   :  { %p594_p4 = por %p593_p3, %p592_p2 }
  0x2a   :  { %p595_p5 = pnand %p594_p4, %p588_p1 }
  0x2c   :  { %598 = shalt.err (!%p595_p5)
}
  0x2d   :  { %65 = dma.hbm_to_vmem [thread:$0]  %s738_s5, 1024, %s60_s18, [#allocation9], %s628_s27, %s628_s27, %s629_s28  }
  0x2e   :  { %619 = dma.done.wait [#allocation3], 128  }
  0x2f   :  { %620 = vsyncadd [#allocation3], 4294967168 }
  0x30   :  { %621 = dma.done.wait [#allocation6], 1280  }
  0x31   :  { %622 = vsyncadd [#allocation6], 4294966016 }
  0x32   :  { %623 = dma.done.wait [#allocation9], 1024  }
  0x33   :  { %624 = vsyncadd [#allocation9], 4294966272  ;;  %v633_v0 = vmov 0.0   ;;  %vm634_vm0 = vmmov 0   ;;  %vm109_vm1 = vcmask 1046528   ;;  %v498_v2 = vld [vmem:[#allocation5] sm:$0xff]  }
  0x34   :  { %440 = vmatprep.subr.bf16.mxu0 %v633_v0  ;;  %444 = vmatprep.mubr.msk.bf16.mxu0 %vm634_vm0, %v633_v0  ;;  %v497_v1 = vld [vmem:[#allocation5 + $0x8] sm:$0x7f]   ;;  %v81_v4 = vld [vmem:[#allocation2] sm:$0xff]  ;;  %vm105_vm2 = vcmask 244736   ;;  %v500_v6 = vld [vmem:[#allocation7 + $0x30] sm:$0xff]   ;;  %s635_s24 = smov [#allocation10]  }
  0x35   :  { %448 = vmatprep.subr.bf16.mxu1 %v633_v0  ;;  %464 = vmatprep.mubr.msk.bf16.mxu1 %vm634_vm0, %v633_v0  ;;  %v111_v3 = vsel %vm109_vm1, %v497_v1, 0  ;;  %v499_v5 = vld [vmem:[#allocation7 + $0x38] sm:$0xff]   ;;  %v82_v7 = vpack.c.bf16 %v81_v4, %v81_v4  ;;  %v501_v8 = vld [vmem:[#allocation7 + $0x28] sm:$0xff]   ;;  %v502_v9 = vld [vmem:[#allocation7 + $0x20] sm:$0xff]   ;;  %s386_s25 = sshll.u32 %s635_s24, 4  ;;  %s387_s25 = int_to_ptr.vmem [resolvable:$true] %s386_s25 }
  0x36   :  { %441 = vmatpush3.bf16.msra.mxu0 %v111_v3  ;;  %449 = vmatpush3.bf16.msra.mxu1 %v499_v5  ;;  %v503_v10 = vld [vmem:[#allocation7 + $0x18] sm:$0xff]   ;;  %v504_v11 = vld [vmem:[#allocation7 + $0x10] sm:$0xff]   ;;  %v505_v12 = vld [vmem:[#allocation7 + $0x8] sm:$0xff]   ;;  %p604_p7 = scmp.lt.s32.totalorder %s387_s25, %s387_s25 }
  0x37   :  { %442 = vmatprep.subr.bf16.mxu0 %v633_v0  ;;  %450 = vmatprep.subr.bf16.mxu1 %v633_v0  ;;  %v506_v13 = vld [vmem:[#allocation7] sm:$0xff]   ;;  %v507_v14 = vld [vmem:[#allocation8 + $0x38] sm:$0xff]   ;;  %v508_v15 = vld [vmem:[#allocation8 + $0x30] sm:$0xff]  }
  0x38   :  { %v509_v16 = vld [vmem:[#allocation8 + $0x28] sm:$0xff]   ;;  %v510_v25 = vld [vmem:[#allocation8 + $0x20] sm:$0xff]   ;;  %v511_v26 = vld [vmem:[#allocation8 + $0x18] sm:$0xff]  }
  0x39   :  { %v397_v17 = vld [vmem:[%s735_s2] ss:$0 sm:$0xff]  ;;  %v512_v27 = vld [vmem:[#allocation8 + $0x10] sm:$0xff]   ;;  %v514_v29 = vld [vmem:[#allocation8] sm:$0xff]  }
  0x3a   :  { %443 = vmatpush3.bf16.msra.mxu0 %v498_v2  ;;  %451 = vmatpush3.bf16.msra.mxu1 %v500_v6  ;;  %v513_v28 = vld [vmem:[#allocation8 + $0x8] sm:$0xff]  }
  0x3b   :  { %468 = vmatprep.subr.bf16.mxu0 %v633_v0  ;;  %452 = vmatprep.subr.bf16.mxu1 %v633_v0  ;;  %v401_v30 = vld [vmem:[%s737_s4] ss:$0 sm:$0xff]  ;;  %s599_s4 = scalar_lea.vmem %s387_s25, 128 }
  0x3c   :  { %v410_v38 = vld [vmem:[%s739_s6] ss:$0 sm:$0xff]  ;;  %p600_p6 = scmp.ne.s32.totalorder %s387_s25, %s599_s4  ;;  %p605_p8 = scmp.lt.s32.totalorder %s599_s4, %s599_s4 }
  0x3d   :  { %445 = vmatmul.mubr.msk.bf16.vlgmr.msra.gmra.mxu0 %vm105_vm2, %v82_v7 }
  0x3e   :  { %484 = vmatprep.mubr.msk.bf16.mxu0 %vm634_vm0, %v633_v0  ;;  %453 = vmatpush3.bf16.msra.mxu1 %v501_v8  ;;  %p606_p9 = por %p605_p8, %p604_p7 }
  0x3f   :  { %454 = vmatprep.subr.bf16.mxu1 %v633_v0  ;;  %469 = vmatpush3.bf16.msra.mxu0 %v507_v14 }
  0x40   :  { %470 = vmatprep.subr.bf16.mxu0 %v633_v0  ;;  %p607_p10 = pnand %p606_p9, %p600_p6 }
  0x42   :  { %455 = vmatpush3.bf16.msra.mxu1 %v502_v9 }
  0x43   :  { %456 = vmatprep.subr.bf16.mxu1 %v633_v0  ;;  %471 = vmatpush3.bf16.msra.mxu0 %v508_v15 }
  0x44   :  { %472 = vmatprep.subr.bf16.mxu0 %v633_v0 }
  0x46   :  { %457 = vmatpush3.bf16.msra.mxu1 %v503_v10 }
  0x47   :  { %458 = vmatprep.subr.bf16.mxu1 %v633_v0  ;;  %473 = vmatpush3.bf16.msra.mxu0 %v509_v16 }
  0x48   :  { %474 = vmatprep.subr.bf16.mxu0 %v633_v0 }
  0x4a   :  { %459 = vmatpush3.bf16.msra.mxu1 %v504_v11 }
  0x4b   :  { %460 = vmatprep.subr.bf16.mxu1 %v633_v0  ;;  %475 = vmatpush3.bf16.msra.mxu0 %v510_v25 }
  0x4c   :  { %476 = vmatprep.subr.bf16.mxu0 %v633_v0 }
  0x4e   :  { %461 = vmatpush3.bf16.msra.mxu1 %v505_v12 }
  0x4f   :  { %462 = vmatprep.subr.bf16.mxu1 %v633_v0  ;;  %477 = vmatpush3.bf16.msra.mxu0 %v511_v26 }
  0x50   :  { %478 = vmatprep.subr.bf16.mxu0 %v633_v0 }
  0x52   :  { %463 = vmatpush3.bf16.msra.mxu1 %v506_v13 }
  0x53   :  { %479 = vmatpush3.bf16.msra.mxu0 %v512_v27 }
  0x54   :  { %480 = vmatprep.subr.bf16.mxu0 %v633_v0 }
  0x57   :  { %481 = vmatpush3.bf16.msra.mxu0 %v513_v28 }
  0x58   :  { %482 = vmatprep.subr.bf16.mxu0 %v633_v0 }
  0x5b   :  { %483 = vmatpush3.bf16.msra.mxu0 %v514_v29 }
  0xfd   :  { %v147_v18 = vpop.f32.mrf.mxu0 }
  0xfe   :  { %v148_v19 = vadd.f32 %v397_v17, %v147_v18 }
  0xff   :  { %v446_v20 = vpop.f32.mrf.mxu0 }
 0x100   :  { %515 = vtanh.f32 %v148_v19 }
 0x101   :  { %v150_v21 = vpop.f32.mrf.mxu0 }
 0x103   :  { %v447_v22 = vpop.f32.mrf.mxu0 }
 0x10d   :  { %v516_v23 = vpop.eup %515 }
 0x10e   :  { %v154_v24 = vpack.c.bf16 %v516_v23, %v516_v23 }
 0x110   :  { %465 = vmatmul.mubr.bf16.vlgmr.msra.gmra.mxu1 %v154_v24 }
 0x1d0   :  { %v260_v31 = vpop.f32.mrf.mxu1 }
 0x1d1   :  { %v261_v32 = vadd.f32 %v401_v30, %v260_v31 }
 0x1d2   :  { %v466_v33 = vpop.f32.mrf.mxu1 }
 0x1d3   :  { %517 = vtanh.f32 %v261_v32 }
 0x1d4   :  { %v263_v34 = vpop.f32.mrf.mxu1 }
 0x1d6   :  { %v467_v35 = vpop.f32.mrf.mxu1 }
 0x1e0   :  { %v518_v36 = vpop.eup %517 }
 0x1e1   :  { %v267_v37 = vpack.c.bf16 %v518_v36, %v518_v36 }
 0x1e3   :  { %485 = vmatmul.mubr.bf16.vlgmr.msra.gmra.mxu0 %v267_v37 }
 0x2a3   :  { %v373_v39 = vpop.f32.mrf.mxu0 }
 0x2a4   :  { %v374_v40 = vadd.f32 %v410_v38, %v373_v39 }
 0x2a5   :  { %v486_v41 = vpop.f32.mrf.mxu0 }
 0x2a6   :  { %379 = vst [vmem:[#allocation10] sm:$0xff] %v374_v40 }
 0x2a7   :  { %v376_v42 = vpop.f32.mrf.mxu0 }
 0x2a8   :  { %610 = shalt.err (!%p607_p10)
}
 0x2a9   :  { %389 = dma.vmem_to_hbm [thread:$0]  %s387_s25, 128, %s740_s7, [#allocation4]   ;;  %v487_v43 = vpop.f32.mrf.mxu0 }
 0x2aa   :  { %625 = dma.done.wait [#allocation4], 128  }
 0x2ab   :  { %626 = vsyncadd [#allocation4], 4294967168 }
 0x2ac   :  { %393 = vsyncpa [#allocation3], 1 }
 0x2ad   :  { %394 = vsyncpa [#allocation6], 1 }
 0x2ae   :  { %395 = vsyncpa [#allocation9], 1 }
 0x2af   :  { %396 = vsyncpa [#allocation4], 1 }

</bundles_post_ra>
